<compile_context>
chip_gen: v7x
topology: tpu7x:2x2x1
jax: 0.10.0
libtpu: 0.0.40
codegen_flags: <defaults>
</compile_context>

<pallas_src>
import functools

import jax
import jax.numpy as jnp
from jax.experimental import pallas as pl
from jax.experimental.pallas import tpu as pltpu


def _cross_attn_kernel(x_ref, y_ref, w_ref, b_ref, o_ref, *,
                       batch, t_len, l_len, c_real):
    """Single-invocation kernel; batch folded into the row (M) dimension.

    x_ref: (B*T, Cp) f32   key/value tokens
    y_ref: (B*L, Cp) f32   query tokens
    w_ref: (Cp, 6*Cp) bf16 [ Wk | Wv | Wq*scale | Wproj | W1 | W2 ]
    b_ref: (8, Cp)   f32   rows 0..5 = bk, bv, bq*scale, bp, b1, b2
    o_ref: (B*L, Cp) f32
    """
    cp = x_ref.shape[-1]
    bl, bt = batch * l_len, batch * t_len

    # Feature mask for LayerNorm over the c_real real features.  Padded lanes
    # of x, y, and every weight/bias slab are exactly zero by construction, so
    # only the variance term needs explicit masking.
    lane = jax.lax.broadcasted_iota(jnp.int32, (1, cp), 1)
    feat_mask = (lane < c_real).astype(jnp.float32)
    inv_c = 1.0 / c_real

    def layernorm(h):
        # LayerNorm weight=1, bias=0 (as set by init_weights), eps=1e-5.
        mu = jnp.sum(h, axis=-1, keepdims=True) * inv_c
        d = (h - mu) * feat_mask
        var = jnp.sum(d * d, axis=-1, keepdims=True) * inv_c
        return d * jax.lax.rsqrt(var + 1e-5)

    def w_slab(i, n=1):
        return w_ref[:, i * cp:(i + n) * cp]      # bf16, lane-aligned slice

    def bias(i):
        return b_ref[i:i + 1, :]                  # (1, Cp) f32 sublane slice

    x = x_ref[...]                                # (B*T, Cp) f32
    y = y_ref[...]                                # (B*L, Cp) f32
    x16 = x.astype(jnp.bfloat16)
    y16 = y.astype(jnp.bfloat16)

    # Fused key/val projection (one N=2*Cp MXU pass) + query projection
    # (softmax scale already folded into Wq/bq at weight-prep time).
    kv = jnp.dot(x16, w_slab(0, 2), preferred_element_type=jnp.float32)
    key = kv[:, :cp] + bias(0)                    # (B*T, Cp)
    val = kv[:, cp:] + bias(1)                    # (B*T, Cp)
    qry = jnp.dot(y16, w_slab(2), preferred_element_type=jnp.float32) + bias(2)

    # scores[l, t] = sum_c qry[l, c] * key[t, c] — NT contraction over the
    # feature axis of both operands (MXU transposed-operand form, no XLU
    # transpose of a (T, Cp) operand); softmax reduces along the lane axis.
    scores = jax.lax.dot_general(
        qry.astype(jnp.bfloat16), key.astype(jnp.bfloat16),
        dimension_numbers=(((1,), (1,)), ((), ())),
        preferred_element_type=jnp.float32)       # (B*L, B*T)

    # Block-diagonal batch mask: batch was folded into rows/cols, so kill the
    # cross-batch entries before the softmax.  Static tiny loop (B=2), no
    # vector integer division needed.
    row = jax.lax.broadcasted_iota(jnp.int32, (bl, bt), 0)
    col = jax.lax.broadcasted_iota(jnp.int32, (bl, bt), 1)
    mask_add = jnp.full((bl, bt), -1e30, jnp.float32)
    for b in range(batch):
        inside = ((row >= b * l_len) & (row < (b + 1) * l_len) &
                  (col >= b * t_len) & (col < (b + 1) * t_len))
        mask_add = jnp.where(inside, 0.0, mask_add)
    scores = scores + mask_add

    m = jnp.max(scores, axis=-1, keepdims=True)
    e = jnp.exp(scores - m)                       # masked entries -> exactly 0
    attn = e * pl.reciprocal(jnp.sum(e, axis=-1, keepdims=True), approx=True)

    # r[l, c] = sum_t attn[l, t] * val[t, c] — bf16 operands, fp32 accumulation.
    r = jnp.dot(attn.astype(jnp.bfloat16), val.astype(jnp.bfloat16),
                preferred_element_type=jnp.float32)             # (B*L, Cp)

    out = layernorm(
        jnp.dot(r.astype(jnp.bfloat16), w_slab(3),
                preferred_element_type=jnp.float32) + bias(3)) + y

    h = jnp.dot(out.astype(jnp.bfloat16), w_slab(4),
                preferred_element_type=jnp.float32) + bias(4)
    # exact (erf-based) GELU, matching torch nn.GELU()
    h = 0.5 * h * (1.0 + jax.lax.erf(h * 0.7071067811865476))
    h = jnp.dot(h.astype(jnp.bfloat16), w_slab(5),
                preferred_element_type=jnp.float32) + bias(5)

    o_ref[...] = layernorm(h + out).astype(o_ref.dtype)


def prepare_params(params, slot_dim):
    """One-time weight preparation (hoisted out of the forward path).

    Transposes torch-style (out, in) weights to (in, out), zero-pads the
    feature dim to a lane-dense Cp, folds the softmax scale into the q
    projection, and packs everything into one bf16 weight slab + one f32 bias
    tile so the kernel takes only 4 inputs.
    """
    (wk, bk), (wv, bv), (wq, bq), (wp, bp), (w1, b1), (w2, b2) = params
    C = slot_dim
    Cp = max(128, ((C + 127) // 128) * 128)
    scale = C ** (-0.5)

    def pad_w(w, s=1.0):
        return (jnp.zeros((Cp, Cp), jnp.float32)
                .at[:C, :C].set(w.T * s).astype(jnp.bfloat16))

    def pad_b(b, s=1.0):
        return jnp.zeros((Cp,), jnp.float32).at[:C].set(b * s)

    w_all = jnp.concatenate(
        [pad_w(wk), pad_w(wv), pad_w(wq, scale),
         pad_w(wp), pad_w(w1), pad_w(w2)], axis=1)          # (Cp, 6*Cp) bf16
    zero = jnp.zeros((Cp,), jnp.float32)
    b_all = jnp.stack([pad_b(bk), pad_b(bv), pad_b(bq, scale),
                       pad_b(bp), pad_b(b1), pad_b(b2), zero, zero])  # (8, Cp)
    return w_all, b_all


@jax.jit
def simple_cross_attention(x, y, w_all, b_all):
    """x: (B, T, C) float32, y: (B, L, C) float32 -> (B, L, C) float32."""
    B, T, C = x.shape
    _, L, _ = y.shape
    Cp = w_all.shape[0]

    # Pad/flatten under the same jit as the kernel (fused, no extra dispatch).
    xf = jnp.zeros((B * T, Cp), jnp.float32).at[:, :C].set(x.reshape(B * T, C))
    yf = jnp.zeros((B * L, Cp), jnp.float32).at[:, :C].set(y.reshape(B * L, C))

    out = pl.pallas_call(
        functools.partial(_cross_attn_kernel,
                          batch=B, t_len=T, l_len=L, c_real=C),
        out_shape=jax.ShapeDtypeStruct((B * L, Cp), jnp.float32),
        # No grid: single invocation, whole arrays resident in VMEM
        # (~0.25 MiB total — trivially fits v5e/v6e/v7x).
        compiler_params=pltpu.CompilerParams(
            vmem_limit_bytes=32 * 1024 * 1024),
    )(xf, yf, w_all, b_all)

    return out[:, :C].reshape(B, L, C)


def _xavier_uniform(key, fan_in, fan_out):
    bound = (6.0 / (fan_in + fan_out)) ** 0.5
    return jax.random.uniform(key, (fan_out, fan_in), jnp.float32, -bound, bound)


def make_params(key, slot_dim):
    """Synthetic init mirroring init_weights (xavier weights, zero bias)."""
    keys = jax.random.split(key, 6)
    params = []
    for k in keys:
        w = _xavier_uniform(k, slot_dim, slot_dim)   # torch-style (out, in)
        b = jnp.zeros((slot_dim,), jnp.float32)
        params.append((w, b))
    return params  # [kv_cross0, kv_cross1, q_cross, proj, out_cross0, out_cross2]
    # (kqv_self linears from __init__ are unused in forward and omitted.)


def _reference(x, y, params, scale):
    # Pure-JAX fp32 reference matching the torch module's forward semantics.
    (wk, bk), (wv, bv), (wq, bq), (wp, bp), (w1, b1), (w2, b2) = params
    lin = lambda h, w, b: jnp.einsum('...i,oi->...o', h, w) + b
    ln = lambda h: (h - h.mean(-1, keepdims=True)) * jax.lax.rsqrt(
        h.var(-1, keepdims=True) + 1e-5)
    key = lin(x, wk, bk)
    val = lin(x, wv, bv)
    qry = lin(y, wq, bq)
    A = jax.nn.softmax(jnp.einsum('btc,blc->btl', key, qry) * scale, axis=1)
    R = jnp.einsum('btc,btl->blc', val, A)
    out = ln(lin(R, wp, bp)) + y
    h = lin(out, w1, b1)
    h = 0.5 * h * (1.0 + jax.lax.erf(h * 0.7071067811865476))
    h = lin(h, w2, b2)
    return ln(h + out)


if __name__ == "__main__":
    B, T, L, C = 2, 16, 8, 32   # batch, key/value seq, query seq, slot_dim

    root = jax.random.PRNGKey(0)
    kx, ky, kp = jax.random.split(root, 3)
    x = jax.random.normal(kx, (B, T, C), jnp.float32)
    y = jax.random.normal(ky, (B, L, C), jnp.float32)
    params = make_params(kp, C)

    # One-time weight preparation, kept out of the per-call forward path.
    w_all, b_all = jax.block_until_ready(prepare_params(params, C))

    out = simple_cross_attention(x, y, w_all, b_all)
    out = jax.block_until_ready(out)

    ref = _reference(x, y, params, C ** (-0.5))
    assert out.shape == (B, L, C)
    # bf16 matmul operands (fp32 accumulation) + approx reciprocal in softmax
    # -> tolerance looser than pure fp32.
    max_err = float(jnp.max(jnp.abs(out - ref)))
    rel_err = float(jnp.linalg.norm(out - ref) / jnp.linalg.norm(ref))
    assert max_err < 1e-1, f"kernel mismatch vs reference: max abs err {max_err}"
    assert rel_err < 4e-2, f"kernel mismatch vs reference: rel err {rel_err}"

    print("KERNEL_OK")
</pallas_src>

<mosaic_0001>
module attributes {stable_mosaic.version = 11 : i64} {
  func.func @_cross_attn_kernel(%arg0: memref<32x128xf32, #tpu.memory_space<vmem>>, %arg1: memref<16x128xf32, #tpu.memory_space<vmem>>, %arg2: memref<128x768xbf16, #tpu.memory_space<vmem>>, %arg3: memref<8x128xf32, #tpu.memory_space<vmem>>, %arg4: memref<16x128xf32, #tpu.memory_space<vmem>>) attributes {dimension_semantics = [], scalar_prefetch = 0 : i64, scratch_operands = 0 : i64, tpu.core_type = #tpu.core_type<tc>} {
    %0 = tpu.iota {dimensions = array<i32: 1>} : vector<1x128xi32>
    %c32_i32 = arith.constant 32 : i32
    %1 = vector.broadcast %c32_i32 : i32 to vector<1x128xi32>
    %2 = arith.cmpi slt, %0, %1 : vector<1x128xi32>
    %3 = arith.extui %2 : vector<1x128xi1> to vector<1x128xi32>
    %4 = arith.sitofp %3 : vector<1x128xi32> to vector<1x128xf32>
    %c0 = arith.constant 0 : index
    %c0_0 = arith.constant 0 : index
    %5 = vector.load %arg0[%c0, %c0_0] : memref<32x128xf32, #tpu.memory_space<vmem>>, vector<32x128xf32>
    %c0_1 = arith.constant 0 : index
    %c0_2 = arith.constant 0 : index
    %6 = vector.load %arg1[%c0_1, %c0_2] : memref<16x128xf32, #tpu.memory_space<vmem>>, vector<16x128xf32>
    %7 = arith.truncf %5 : vector<32x128xf32> to vector<32x128xbf16>
    %8 = arith.truncf %6 : vector<16x128xf32> to vector<16x128xbf16>
    %c0_3 = arith.constant 0 : index
    %c0_4 = arith.constant 0 : index
    %9 = vector.load %arg2[%c0_3, %c0_4] : memref<128x768xbf16, #tpu.memory_space<vmem>>, vector<128x256xbf16>
    %cst = arith.constant dense<0.000000e+00> : vector<32x256xf32>
    %10 = tpu.matmul %7, %9, %cst {dimension_numbers = #tpu.dot_dimension_numbers<[1], [0], [0], [1], [0, 0, 1, 1], [], []>} : vector<32x128xbf16>, vector<128x256xbf16>, vector<32x256xf32> -> vector<32x256xf32>
    %11 = vector.extract_strided_slice %10 {offsets = [0, 0], sizes = [32, 128], strides = [1, 1]} : vector<32x256xf32> to vector<32x128xf32>
    %c0_5 = arith.constant 0 : index
    %c0_6 = arith.constant 0 : index
    %12 = vector.load %arg3[%c0_5, %c0_6] : memref<8x128xf32, #tpu.memory_space<vmem>>, vector<1x128xf32>
    %13 = vector.broadcast %12 : vector<1x128xf32> to vector<32x128xf32>
    %14 = arith.addf %11, %13 : vector<32x128xf32>
    %15 = vector.extract_strided_slice %10 {offsets = [0, 128], sizes = [32, 128], strides = [1, 1]} : vector<32x256xf32> to vector<32x128xf32>
    %c1 = arith.constant 1 : index
    %c0_7 = arith.constant 0 : index
    %16 = vector.load %arg3[%c1, %c0_7] : memref<8x128xf32, #tpu.memory_space<vmem>>, vector<1x128xf32>
    %17 = vector.broadcast %16 : vector<1x128xf32> to vector<32x128xf32>
    %18 = arith.addf %15, %17 : vector<32x128xf32>
    %c0_8 = arith.constant 0 : index
    %c256 = arith.constant 256 : index
    %19 = vector.load %arg2[%c0_8, %c256] : memref<128x768xbf16, #tpu.memory_space<vmem>>, vector<128x128xbf16>
    %cst_9 = arith.constant dense<0.000000e+00> : vector<16x128xf32>
    %20 = tpu.matmul %8, %19, %cst_9 {dimension_numbers = #tpu.dot_dimension_numbers<[1], [0], [0], [1], [0, 0, 1, 1], [], []>} : vector<16x128xbf16>, vector<128x128xbf16>, vector<16x128xf32> -> vector<16x128xf32>
    %c2 = arith.constant 2 : index
    %c0_10 = arith.constant 0 : index
    %21 = vector.load %arg3[%c2, %c0_10] : memref<8x128xf32, #tpu.memory_space<vmem>>, vector<1x128xf32>
    %22 = vector.broadcast %21 : vector<1x128xf32> to vector<16x128xf32>
    %23 = arith.addf %20, %22 : vector<16x128xf32>
    %24 = arith.truncf %23 : vector<16x128xf32> to vector<16x128xbf16>
    %25 = arith.truncf %14 : vector<32x128xf32> to vector<32x128xbf16>
    %cst_11 = arith.constant dense<0.000000e+00> : vector<16x32xf32>
    %26 = tpu.matmul %24, %25, %cst_11 {dimension_numbers = #tpu.dot_dimension_numbers<[1], [1], [0], [0], [0, 0, 1, 0], [], []>} : vector<16x128xbf16>, vector<32x128xbf16>, vector<16x32xf32> -> vector<16x32xf32>
    %27 = tpu.iota {dimensions = array<i32: 0>} : vector<16x32xi32>
    %28 = tpu.iota {dimensions = array<i32: 1>} : vector<16x32xi32>
    %cst_12 = arith.constant -1.000000e+30 : f32
    %29 = vector.broadcast %cst_12 : f32 to vector<16x32xf32>
    %c0_i32 = arith.constant 0 : i32
    %30 = vector.broadcast %c0_i32 : i32 to vector<16x32xi32>
    %31 = arith.cmpi sge, %27, %30 : vector<16x32xi32>
    %c8_i32 = arith.constant 8 : i32
    %32 = vector.broadcast %c8_i32 : i32 to vector<16x32xi32>
    %33 = arith.cmpi slt, %27, %32 : vector<16x32xi32>
    %34 = arith.andi %31, %33 : vector<16x32xi1>
    %c0_i32_13 = arith.constant 0 : i32
    %35 = vector.broadcast %c0_i32_13 : i32 to vector<16x32xi32>
    %36 = arith.cmpi sge, %28, %35 : vector<16x32xi32>
    %37 = arith.andi %34, %36 : vector<16x32xi1>
    %c16_i32 = arith.constant 16 : i32
    %38 = vector.broadcast %c16_i32 : i32 to vector<16x32xi32>
    %39 = arith.cmpi slt, %28, %38 : vector<16x32xi32>
    %40 = arith.andi %37, %39 : vector<16x32xi1>
    %cst_14 = arith.constant 0.000000e+00 : f32
    %41 = vector.broadcast %cst_14 : f32 to vector<16x32xf32>
    %42 = arith.select %40, %41, %29 : vector<16x32xi1>, vector<16x32xf32>
    %c8_i32_15 = arith.constant 8 : i32
    %43 = vector.broadcast %c8_i32_15 : i32 to vector<16x32xi32>
    %44 = arith.cmpi sge, %27, %43 : vector<16x32xi32>
    %c16_i32_16 = arith.constant 16 : i32
    %45 = vector.broadcast %c16_i32_16 : i32 to vector<16x32xi32>
    %46 = arith.cmpi slt, %27, %45 : vector<16x32xi32>
    %47 = arith.andi %44, %46 : vector<16x32xi1>
    %c16_i32_17 = arith.constant 16 : i32
    %48 = vector.broadcast %c16_i32_17 : i32 to vector<16x32xi32>
    %49 = arith.cmpi sge, %28, %48 : vector<16x32xi32>
    %50 = arith.andi %47, %49 : vector<16x32xi1>
    %c32_i32_18 = arith.constant 32 : i32
    %51 = vector.broadcast %c32_i32_18 : i32 to vector<16x32xi32>
    %52 = arith.cmpi slt, %28, %51 : vector<16x32xi32>
    %53 = arith.andi %50, %52 : vector<16x32xi1>
    %cst_19 = arith.constant 0.000000e+00 : f32
    %54 = vector.broadcast %cst_19 : f32 to vector<16x32xf32>
    %55 = arith.select %53, %54, %42 : vector<16x32xi1>, vector<16x32xf32>
    %56 = arith.addf %26, %55 : vector<16x32xf32>
    %cst_20 = arith.constant dense<0xFF800000> : vector<16xf32>
    %57 = vector.multi_reduction <maximumf>, %56, %cst_20 [1] : vector<16x32xf32> to vector<16xf32>
    %58 = vector.shape_cast %57 : vector<16xf32> to vector<16x1xf32>
    %59 = vector.broadcast %58 : vector<16x1xf32> to vector<16x32xf32>
    %60 = arith.subf %56, %59 : vector<16x32xf32>
    %61 = math.exp %60 : vector<16x32xf32>
    %cst_21 = arith.constant dense<0.000000e+00> : vector<16xf32>
    %62 = vector.multi_reduction <add>, %61, %cst_21 [1] : vector<16x32xf32> to vector<16xf32>
    %63 = vector.shape_cast %62 : vector<16xf32> to vector<16x1xf32>
    %64 = tpu.reciprocal %63 {approx = true} : vector<16x1xf32> -> vector<16x1xf32>
    %65 = vector.broadcast %64 : vector<16x1xf32> to vector<16x32xf32>
    %66 = arith.mulf %61, %65 : vector<16x32xf32>
    %67 = arith.truncf %66 : vector<16x32xf32> to vector<16x32xbf16>
    %68 = arith.truncf %18 : vector<32x128xf32> to vector<32x128xbf16>
    %cst_22 = arith.constant dense<0.000000e+00> : vector<16x128xf32>
    %69 = tpu.matmul %67, %68, %cst_22 {dimension_numbers = #tpu.dot_dimension_numbers<[1], [0], [0], [1], [0, 0, 1, 1], [], []>} : vector<16x32xbf16>, vector<32x128xbf16>, vector<16x128xf32> -> vector<16x128xf32>
    %70 = arith.truncf %69 : vector<16x128xf32> to vector<16x128xbf16>
    %c0_23 = arith.constant 0 : index
    %c384 = arith.constant 384 : index
    %71 = vector.load %arg2[%c0_23, %c384] : memref<128x768xbf16, #tpu.memory_space<vmem>>, vector<128x128xbf16>
    %cst_24 = arith.constant dense<0.000000e+00> : vector<16x128xf32>
    %72 = tpu.matmul %70, %71, %cst_24 {dimension_numbers = #tpu.dot_dimension_numbers<[1], [0], [0], [1], [0, 0, 1, 1], [], []>} : vector<16x128xbf16>, vector<128x128xbf16>, vector<16x128xf32> -> vector<16x128xf32>
    %c3 = arith.constant 3 : index
    %c0_25 = arith.constant 0 : index
    %73 = vector.load %arg3[%c3, %c0_25] : memref<8x128xf32, #tpu.memory_space<vmem>>, vector<1x128xf32>
    %74 = vector.broadcast %73 : vector<1x128xf32> to vector<16x128xf32>
    %75 = arith.addf %72, %74 : vector<16x128xf32>
    %cst_26 = arith.constant dense<0.000000e+00> : vector<16xf32>
    %76 = vector.multi_reduction <add>, %75, %cst_26 [1] : vector<16x128xf32> to vector<16xf32>
    %77 = vector.shape_cast %76 : vector<16xf32> to vector<16x1xf32>
    %cst_27 = arith.constant 3.125000e-02 : f32
    %78 = vector.broadcast %cst_27 : f32 to vector<16x1xf32>
    %79 = arith.mulf %77, %78 : vector<16x1xf32>
    %80 = vector.broadcast %79 : vector<16x1xf32> to vector<16x128xf32>
    %81 = arith.subf %75, %80 : vector<16x128xf32>
    %82 = vector.broadcast %4 : vector<1x128xf32> to vector<16x128xf32>
    %83 = arith.mulf %81, %82 : vector<16x128xf32>
    %84 = arith.mulf %83, %83 : vector<16x128xf32>
    %cst_28 = arith.constant dense<0.000000e+00> : vector<16xf32>
    %85 = vector.multi_reduction <add>, %84, %cst_28 [1] : vector<16x128xf32> to vector<16xf32>
    %86 = vector.shape_cast %85 : vector<16xf32> to vector<16x1xf32>
    %cst_29 = arith.constant 3.125000e-02 : f32
    %87 = vector.broadcast %cst_29 : f32 to vector<16x1xf32>
    %88 = arith.mulf %86, %87 : vector<16x1xf32>
    %cst_30 = arith.constant 9.99999974E-6 : f32
    %89 = vector.broadcast %cst_30 : f32 to vector<16x1xf32>
    %90 = arith.addf %88, %89 : vector<16x1xf32>
    %91 = math.rsqrt %90 : vector<16x1xf32>
    %92 = vector.broadcast %91 : vector<16x1xf32> to vector<16x128xf32>
    %93 = arith.mulf %83, %92 : vector<16x128xf32>
    %94 = arith.addf %93, %6 : vector<16x128xf32>
    %95 = arith.truncf %94 : vector<16x128xf32> to vector<16x128xbf16>
    %c0_31 = arith.constant 0 : index
    %c512 = arith.constant 512 : index
    %96 = vector.load %arg2[%c0_31, %c512] : memref<128x768xbf16, #tpu.memory_space<vmem>>, vector<128x128xbf16>
    %cst_32 = arith.constant dense<0.000000e+00> : vector<16x128xf32>
    %97 = tpu.matmul %95, %96, %cst_32 {dimension_numbers = #tpu.dot_dimension_numbers<[1], [0], [0], [1], [0, 0, 1, 1], [], []>} : vector<16x128xbf16>, vector<128x128xbf16>, vector<16x128xf32> -> vector<16x128xf32>
    %c4 = arith.constant 4 : index
    %c0_33 = arith.constant 0 : index
    %98 = vector.load %arg3[%c4, %c0_33] : memref<8x128xf32, #tpu.memory_space<vmem>>, vector<1x128xf32>
    %99 = vector.broadcast %98 : vector<1x128xf32> to vector<16x128xf32>
    %100 = arith.addf %97, %99 : vector<16x128xf32>
    %cst_34 = arith.constant 5.000000e-01 : f32
    %101 = vector.broadcast %cst_34 : f32 to vector<16x128xf32>
    %102 = arith.mulf %101, %100 : vector<16x128xf32>
    %cst_35 = arith.constant 0.707106769 : f32
    %103 = vector.broadcast %cst_35 : f32 to vector<16x128xf32>
    %104 = arith.mulf %100, %103 : vector<16x128xf32>
    %105 = math.erf %104 : vector<16x128xf32>
    %cst_36 = arith.constant 1.000000e+00 : f32
    %106 = vector.broadcast %cst_36 : f32 to vector<16x128xf32>
    %107 = arith.addf %106, %105 : vector<16x128xf32>
    %108 = arith.mulf %102, %107 : vector<16x128xf32>
    %109 = arith.truncf %108 : vector<16x128xf32> to vector<16x128xbf16>
    %c0_37 = arith.constant 0 : index
    %c640 = arith.constant 640 : index
    %110 = vector.load %arg2[%c0_37, %c640] : memref<128x768xbf16, #tpu.memory_space<vmem>>, vector<128x128xbf16>
    %cst_38 = arith.constant dense<0.000000e+00> : vector<16x128xf32>
    %111 = tpu.matmul %109, %110, %cst_38 {dimension_numbers = #tpu.dot_dimension_numbers<[1], [0], [0], [1], [0, 0, 1, 1], [], []>} : vector<16x128xbf16>, vector<128x128xbf16>, vector<16x128xf32> -> vector<16x128xf32>
    %c5 = arith.constant 5 : index
    %c0_39 = arith.constant 0 : index
    %112 = vector.load %arg3[%c5, %c0_39] : memref<8x128xf32, #tpu.memory_space<vmem>>, vector<1x128xf32>
    %113 = vector.broadcast %112 : vector<1x128xf32> to vector<16x128xf32>
    %114 = arith.addf %111, %113 : vector<16x128xf32>
    %115 = arith.addf %114, %94 : vector<16x128xf32>
    %cst_40 = arith.constant dense<0.000000e+00> : vector<16xf32>
    %116 = vector.multi_reduction <add>, %115, %cst_40 [1] : vector<16x128xf32> to vector<16xf32>
    %117 = vector.shape_cast %116 : vector<16xf32> to vector<16x1xf32>
    %cst_41 = arith.constant 3.125000e-02 : f32
    %118 = vector.broadcast %cst_41 : f32 to vector<16x1xf32>
    %119 = arith.mulf %117, %118 : vector<16x1xf32>
    %120 = vector.broadcast %119 : vector<16x1xf32> to vector<16x128xf32>
    %121 = arith.subf %115, %120 : vector<16x128xf32>
    %122 = vector.broadcast %4 : vector<1x128xf32> to vector<16x128xf32>
    %123 = arith.mulf %121, %122 : vector<16x128xf32>
    %124 = arith.mulf %123, %123 : vector<16x128xf32>
    %cst_42 = arith.constant dense<0.000000e+00> : vector<16xf32>
    %125 = vector.multi_reduction <add>, %124, %cst_42 [1] : vector<16x128xf32> to vector<16xf32>
    %126 = vector.shape_cast %125 : vector<16xf32> to vector<16x1xf32>
    %cst_43 = arith.constant 3.125000e-02 : f32
    %127 = vector.broadcast %cst_43 : f32 to vector<16x1xf32>
    %128 = arith.mulf %126, %127 : vector<16x1xf32>
    %cst_44 = arith.constant 9.99999974E-6 : f32
    %129 = vector.broadcast %cst_44 : f32 to vector<16x1xf32>
    %130 = arith.addf %128, %129 : vector<16x1xf32>
    %131 = math.rsqrt %130 : vector<16x1xf32>
    %132 = vector.broadcast %131 : vector<16x1xf32> to vector<16x128xf32>
    %133 = arith.mulf %123, %132 : vector<16x128xf32>
    %c0_45 = arith.constant 0 : index
    %c0_46 = arith.constant 0 : index
    %134 = vector.load %arg4[%c0_45, %c0_46] : memref<16x128xf32, #tpu.memory_space<vmem>>, vector<16x128xf32>
    tpu.vector_store %arg4[%c0_45, %c0_46], %133 {strides = array<i32>} : memref<16x128xf32, #tpu.memory_space<vmem>>, vector<16x128xf32>,
    return
  }
}

</mosaic_0001>

<bundles_post_ra>
// kernel: simple_cross_attention.1
= control target key start
LH: loop header
LB: loop body
LE: loop exit
PB: predicated region body
PF: predicated region fallthrough
CT: control target
= control target key end

     0   :  { %9 = vsyncpa [#allocation3], 0  ;;  %s1170_s15 = smov [#allocation2]   ;;  %s1335_s0 = inlined_call_operand.vmem [shape: f32[32,128], index: 0, kind: input, shape index: {}]   ;;  %s1336_s1 = inlined_call_operand.vmem [shape: f32[16,128], index: 1, kind: input, shape index: {}]   ;;  %s1337_s2 = inlined_call_operand.hbm [shape: bf16[128,768], index: 2, kind: input, shape index: {}]   ;;  %s1338_s3 = inlined_call_operand.vmem [shape: f32[8,128], index: 3, kind: input, shape index: {}]   ;;  %s1339_s4 = inlined_call_operand.vmem [shape: f32[16,128], index: 4, kind: output, shape index: {}]  }
   0x1   :  { %s19_s16 = sshll.u32 %s1170_s15, 4  ;;  %s1146_s19 = scalar_lea.hbm %s1337_s2, 6144  ;;  %s20_s16 = int_to_ptr.vmem [resolvable:$true] %s19_s16 }
   0x2   :  { %p1147_p0 = scmp.ne.s32.totalorder %s1337_s2, %s1146_s19  ;;  %p1150_p1 = scmp.lt.u32.totalorder %s1146_s19, %s1337_s2 }
   0x4   :  { %p1152_p2 = pnand %p1150_p1, %p1147_p0 }
   0x6   :  { %1155 = shalt.err (!%p1152_p2)
}
   0x7   :  { %s1156_s24 = scalar_lea.vmem %s20_s16, 6144  ;;  %p1161_p4 = scmp.lt.s32.totalorder %s20_s16, %s20_s16 }
   0x8   :  { %p1157_p3 = scmp.ne.s32.totalorder %s20_s16, %s1156_s24  ;;  %p1162_p5 = scmp.lt.s32.totalorder %s1156_s24, %s1156_s24 }
   0xa   :  { %p1163_p6 = por %p1162_p5, %p1161_p4 }
   0xc   :  { %p1164_p7 = pnand %p1163_p6, %p1157_p3 }
   0xe   :  { %1167 = shalt.err (!%p1164_p7)
}
   0xf   :  { %s1171_s25 = smov 384   ;;  %s1172_s26 = smov 24  }
  0x10   :  { %25 = dma.hbm_to_vmem [thread:$0]  %s1337_s2, 6144, %s20_s16, [#allocation3], %s1171_s25, %s1171_s25, %s1172_s26  }
  0x11   :  { %1168 = dma.done.wait [#allocation3], 6144  }
  0x12   :  { %1169 = vsyncadd [#allocation3], 4294961152  ;;  %v1173_v0 = vmov 0.0   ;;  %v1174_v1 = vmov 0   ;;  %vm1175_vm0 = vmmov 0   ;;  %v37_v24 = vld [vmem:[%s1335_s0] sm:$0xff] }
  0x13   :  { %967 = vmatprep.subr.bf16.mxu1 %v1173_v0  ;;  %174 = vmatprep.mubr.bf16.mxu0 %v1174_v1  ;;  %v1070_v2 = vld [vmem:[#allocation2 + $0x4] ss:$24 sps:$4 sm:$0xff]   ;;  %v1072_v3 = vld [vmem:[#allocation2] ss:$24 sps:$4 sm:$0xff]   ;;  %v1073_v4 = vld [vmem:[#allocation2 + $0x34] ss:$24 sps:$4 sm:$0xff]  }
  0x14   :  { %983 = vmatprep.mubr.msk.bf16.mxu1 %vm1175_vm0, %v1173_v0  ;;  %142 = vmatprep.subr.bf16.mxu0 %v1070_v2  ;;  %v1075_v5 = vld [vmem:[#allocation2 + $0x30] ss:$24 sps:$4 sm:$0xff]   ;;  %v1076_v6 = vld [vmem:[#allocation2 + $0x64] ss:$24 sps:$4 sm:$0xff]   ;;  %v1078_v8 = vld [vmem:[#allocation2 + $0x60] ss:$24 sps:$4 sm:$0xff]   ;;  %v32_v2 = vlaneseq }
  0x15   :  { %143 = vmatpush1.bf16.msra.mxu0 %v1072_v3  ;;  %v1082_v7 = vld [vmem:[#allocation2 + $0x8] ss:$24 sps:$4 sm:$0xff]   ;;  %v1079_v9 = vld [vmem:[#allocation2 + $0x94] ss:$24 sps:$4 sm:$0xff]   ;;  %v1086_v10 = vld [vmem:[#allocation2 + $0x38] ss:$24 sps:$4 sm:$0xff]  }
  0x16   :  { %144 = vmatprep.subr.bf16.mxu0 %v1073_v4  ;;  %968 = vmatpush3.bf16.msra.mxu1 %v1082_v7  ;;  %v1081_v11 = vld [vmem:[#allocation2 + $0x90] ss:$24 sps:$4 sm:$0xff]   ;;  %v1083_v12 = vld [vmem:[#allocation2 + $0xc4] ss:$24 sps:$4 sm:$0xff]   ;;  %v1085_v14 = vld [vmem:[#allocation2 + $0xc0] ss:$24 sps:$4 sm:$0xff]  }
  0x17   :  { %969 = vmatprep.subr.bf16.mxu1 %v1173_v0  ;;  %v1090_v13 = vld [vmem:[#allocation2 + $0x68] ss:$24 sps:$4 sm:$0xff]   ;;  %v1087_v15 = vld [vmem:[#allocation2 + $0xf4] ss:$24 sps:$4 sm:$0xff]   ;;  %v1094_v16 = vld [vmem:[#allocation2 + $0x98] ss:$24 sps:$4 sm:$0xff]  }
  0x18   :  { %v1089_v17 = vld [vmem:[#allocation2 + $0xf0] ss:$24 sps:$4 sm:$0xff]   ;;  %v1091_v18 = vld [vmem:[#allocation2 + $0x124] ss:$24 sps:$4 sm:$0xff]   ;;  %v1093_v20 = vld [vmem:[#allocation2 + $0x120] ss:$24 sps:$4 sm:$0xff]  }
  0x19   :  { %145 = vmatpush1.bf16.msra.mxu0 %v1075_v5  ;;  %v1098_v19 = vld [vmem:[#allocation2 + $0xc8] ss:$24 sps:$4 sm:$0xff]   ;;  %v1095_v21 = vld [vmem:[#allocation2 + $0x154] ss:$24 sps:$4 sm:$0xff]   ;;  %v1099_v22 = vld [vmem:[#allocation2 + $0xf8] ss:$24 sps:$4 sm:$0xff]  }
  0x1a   :  { %146 = vmatprep.subr.bf16.mxu0 %v1076_v6  ;;  %970 = vmatpush3.bf16.msra.mxu1 %v1086_v10  ;;  %v1097_v23 = vld [vmem:[#allocation2 + $0x150] ss:$24 sps:$4 sm:$0xff]   ;;  %v1233_v29 = vld [vmem:[%s1336_s1] sm:$0xff]  ;;  %v40_v32 = vld [vmem:[%s1335_s0 + $0x18] sm:$0xff]  ;;  %v1271_v3 = vand.u32 127, %v32_v2  ;;  %vm397_vm5 = vcmask 261120  }
  0x1b   :  { %971 = vmatprep.subr.bf16.mxu1 %v1173_v0  ;;  %v38_v25 = vld [vmem:[%s1335_s0 + $0x8] sm:$0xff]  ;;  %v1101_v28 = vld [vmem:[#allocation2 + $0x158] ss:$24 sps:$4 sm:$0xff]   ;;  %v886_v36 = vld [vmem:[%s1338_s3] ss:$0 sm:$0xff] }
  0x1c   :  { %v1100_v26 = vld [vmem:[#allocation2 + $0x128] ss:$24 sps:$4 sm:$0xff]   ;;  %v43_v27 = vpack.c.bf16 %v38_v25, %v37_v24  ;;  %v39_v31 = vld [vmem:[%s1335_s0 + $0x10] sm:$0xff]  ;;  %vm34_vm1 = vcmp.lt.s32.totalorder %v1271_v3, 32  ;;  %vm349_vm2 = vcmp.ge.s32.totalorder %v1271_v3, 16  ;;  %vm338_vm3 = vcmp.lt.s32.totalorder %v1271_v3, 16 }
  0x1d   :  { %147 = vmatpush1.bf16.msra.mxu0 %v1078_v8  ;;  %v1238_v30 = vld [vmem:[%s1336_s1 + $0x8] sm:$0xff]  ;;  %v44_v34 = vpack.c.bf16 %v40_v32, %v39_v31  ;;  %v887_v38 = vld [vmem:[%s1338_s3 + $0x1] ss:$0 sm:$0xff]  ;;  %v888_v43 = vld [vmem:[%s1338_s3 + $0x2] ss:$0 sm:$0xff] }
  0x1e   :  { %148 = vmatprep.subr.bf16.mxu0 %v1079_v9  ;;  %972 = vmatpush3.bf16.msra.mxu1 %v1090_v13  ;;  %v45_v33 = vpack.c.bf16 %v1238_v30, %v1233_v29  ;;  %vm353_vm4 = vmand %vm349_vm2, %vm34_vm1  ;;  %v1176_v4 = vmov -1e+30   ;;  %v1102_v25 = vld [vmem:[#allocation2 + $0xc] ss:$24 sps:$4 sm:$0xff]   ;;  %v1107_v32 = vld [vmem:[#allocation2 + $0xfc] ss:$24 sps:$4 sm:$0xff]  }
  0x1f   :  { %973 = vmatprep.subr.bf16.mxu1 %v1173_v0  ;;  %v341_v5 = vsel %vm338_vm3, 0.0, %v1176_v4  ;;  %v355_v7 = vsel %vm353_vm4, 0.0, %v1176_v4  ;;  %v1106_v31 = vld [vmem:[#allocation2 + $0xcc] ss:$24 sps:$4 sm:$0xff]   ;;  %v1114_v3 = vld [vmem:[#allocation2 + $0xd0] ss:$24 sps:$4 sm:$0xff]  }
  0x21   :  { %149 = vmatpush1.bf16.msra.mxu0 %v1081_v11 }
  0x22   :  { %150 = vmatprep.subr.bf16.mxu0 %v1083_v12  ;;  %974 = vmatpush3.bf16.msra.mxu1 %v1094_v16 }
  0x23   :  { %975 = vmatprep.subr.bf16.mxu1 %v1173_v0 }
  0x25   :  { %151 = vmatpush1.bf16.msra.mxu0 %v1085_v14 }
  0x26   :  { %152 = vmatprep.subr.bf16.mxu0 %v1087_v15  ;;  %976 = vmatpush3.bf16.msra.mxu1 %v1098_v19 }
  0x27   :  { %977 = vmatprep.subr.bf16.mxu1 %v1173_v0 }
  0x29   :  { %153 = vmatpush1.bf16.msra.mxu0 %v1089_v17 }
  0x2a   :  { %154 = vmatprep.subr.bf16.mxu0 %v1091_v18  ;;  %978 = vmatpush3.bf16.msra.mxu1 %v1099_v22 }
  0x2b   :  { %979 = vmatprep.subr.bf16.mxu1 %v1173_v0 }
  0x2d   :  { %155 = vmatpush1.bf16.msra.mxu0 %v1093_v20 }
  0x2e   :  { %156 = vmatprep.subr.bf16.mxu0 %v1095_v21  ;;  %980 = vmatpush3.bf16.msra.mxu1 %v1100_v26  ;;  %v1103_v26 = vld [vmem:[#allocation2 + $0x3c] ss:$24 sps:$4 sm:$0xff]  }
  0x2f   :  { %981 = vmatprep.subr.bf16.mxu1 %v1173_v0 }
  0x31   :  { %157 = vmatpush1.bf16.msra.mxu0 %v1097_v23 }
  0x32   :  { %987 = vmatprep.subr.bf16.mxu0 %v1173_v0  ;;  %982 = vmatpush3.bf16.msra.mxu1 %v1101_v28  ;;  %v1105_v28 = vld [vmem:[#allocation2 + $0x9c] ss:$24 sps:$4 sm:$0xff]  }
  0x33   :  { %1003 = vmatprep.subr.bf16.mxu1 %v1173_v0 }
  0x34   :  { %175 = vmatmul.mubr.bf16.vlgmr.msra.gmra.mrb[0].mxu0 %v43_v27  ;;  %v1104_v27 = vld [vmem:[#allocation2 + $0x6c] ss:$24 sps:$4 sm:$0xff]  }
  0x35   :  { %184 = vmatprep.mubr.bf16.mxu0 %v1174_v1  ;;  %984 = vmatmul.mubr.bf16.vlgmr.msra.gmra.mrb[0].mxu1 %v45_v33  ;;  %v1108_v33 = vld [vmem:[#allocation2 + $0x12c] ss:$24 sps:$4 sm:$0xff]  }
  0x36   :  { %1019 = vmatprep.mubr.msk.bf16.mxu1 %vm1175_vm0, %v1173_v0  ;;  %1004 = vmatpush3.bf16.msra.mxu1 %v1102_v25  ;;  %v1120_v25 = vld [vmem:[#allocation2 + $0x74] ss:$24 sps:$4 sm:$0xff]  }
  0x37   :  { %1005 = vmatprep.subr.bf16.mxu1 %v1173_v0 }
  0x3a   :  { %1006 = vmatpush3.bf16.msra.mxu1 %v1103_v26  ;;  %v1121_v26 = vld [vmem:[#allocation2 + $0xa4] ss:$24 sps:$4 sm:$0xff]  }
  0x3b   :  { %1007 = vmatprep.subr.bf16.mxu1 %v1173_v0 }
  0x3c   :  { %185 = vmatmul.mubr.bf16.gmra.mrb[4].mxu0 %v44_v34 }
  0x3d   :  { %991 = vmatprep.mubr.msk.bf16.mxu0 %vm1175_vm0, %v1173_v0 }
  0x3e   :  { %1008 = vmatpush3.bf16.msra.mxu1 %v1104_v27  ;;  %v1122_v27 = vld [vmem:[#allocation2 + $0xd4] ss:$24 sps:$4 sm:$0xff]  }
  0x3f   :  { %1009 = vmatprep.subr.bf16.mxu1 %v1173_v0 }
  0x42   :  { %1010 = vmatpush3.bf16.msra.mxu1 %v1105_v28  ;;  %v1123_v28 = vld [vmem:[#allocation2 + $0x104] ss:$24 sps:$4 sm:$0xff]  }
  0x43   :  { %1011 = vmatprep.subr.bf16.mxu1 %v1173_v0 }
  0x46   :  { %1012 = vmatpush3.bf16.msra.mxu1 %v1106_v31  ;;  %v907_v31 = vld [vmem:[%s1338_s3 + $0x4] ss:$0 sm:$0xff] }
  0x47   :  { %1013 = vmatprep.subr.bf16.mxu1 %v1173_v0 }
  0x4a   :  { %1014 = vmatpush3.bf16.msra.mxu1 %v1107_v32 }
  0x4b   :  { %1015 = vmatprep.subr.bf16.mxu1 %v1173_v0 }
  0x4e   :  { %1016 = vmatpush3.bf16.msra.mxu1 %v1108_v33 }
  0x4f   :  { %1017 = vmatprep.subr.bf16.mxu1 %v1173_v0 }
 0x107   :  { %v176_v35 = vpop.f32.mrb[0].mxu0 }
 0x108   :  { %v178_v37 = vpop.f32.mrb[1].mxu0  ;;  %v200_v40 = vadd.f32 %v886_v36, %v176_v35  ;;  %v316_v47 = vpop.f32.mrb[0].mxu1 }
 0x109   :  { %v180_v39 = vpop.f32.mrb[2].mxu0  ;;  %v209_v44 = vadd.f32 %v887_v38, %v178_v37  ;;  %v317_v49 = vadd.f32 %v888_v43, %v316_v47  ;;  %v985_v50 = vpop.f32.mrb[1].mxu1  ;;  %v898_v47 = vld [vmem:[%s1338_s3 + $0x3] ss:$0 sm:$0xff] }
 0x10a   :  { %v201_v41 = vadd.f32 %v886_v36, %v180_v39  ;;  %v182_v42 = vpop.f32.mrb[3].mxu0  ;;  %v319_v51 = vpop.f32.mrb[2].mxu1 }
 0x10b   :  { %v210_v45 = vadd.f32 %v887_v38, %v182_v42  ;;  %v320_v53 = vadd.f32 %v888_v43, %v319_v51  ;;  %v986_v54 = vpop.f32.mrb[3].mxu1 }
 0x10c   :  { %v324_v46 = vpack.c.bf16 %v201_v41, %v200_v40  ;;  %v1109_v41 = vld [vmem:[#allocation2 + $0x15c] ss:$24 sps:$4 sm:$0xff]   ;;  %v1110_v54 = vld [vmem:[#allocation2 + $0x10] ss:$24 sps:$4 sm:$0xff]  }
 0x10d   :  { %v421_v48 = vpack.c.bf16 %v210_v45, %v209_v44  ;;  %v323_v57 = vpack.c.bf16 %v320_v53, %v317_v49  ;;  %1018 = vmatpush3.bf16.msra.mxu1 %v1109_v41 }
 0x10e   :  { %988 = vmatpush3.bf16.xpose.msra.mxu0 %v324_v46  ;;  %1043 = vmatprep.subr.bf16.mxu1 %v1173_v0 }
 0x10f   :  { %v186_v52 = vpop.f32.mrb[4].mxu0  ;;  %989 = vmatprep.subr.bf16.mxu0 %v1173_v0 }
 0x110   :  { %v188_v55 = vpop.f32.mrb[5].mxu0  ;;  %v202_v58 = vadd.f32 %v886_v36, %v186_v52 }
 0x111   :  { %v190_v56 = vpop.f32.mrb[6].mxu0  ;;  %v211_v61 = vadd.f32 %v887_v38, %v188_v55  ;;  %v1111_v55 = vld [vmem:[#allocation2 + $0x40] ss:$24 sps:$4 sm:$0xff]  }
 0x112   :  { %v203_v59 = vadd.f32 %v886_v36, %v190_v56  ;;  %v192_v60 = vpop.f32.mrb[7].mxu0 }
 0x113   :  { %v212_v62 = vadd.f32 %v887_v38, %v192_v60 }
 0x114   :  { %v325_v63 = vpack.c.bf16 %v203_v59, %v202_v58  ;;  %v1303_v58 = vsel %vm34_vm1, 1.0, %v1173_v0 }
 0x115   :  { %v422_v1 = vpack.c.bf16 %v212_v62, %v211_v61 }
 0x116   :  { %990 = vmatpush3.bf16.xpose.msra.mxu0 %v325_v63 }
 0x117   :  { %995 = vmatprep.subr.bf16.mxu0 %v1173_v0 }
 0x11d   :  { %992 = vmatmul.mubr.bf16.vlgmr.msra.gmra.mrb[8].mxu0 %v323_v57 }
 0x11e   :  { %996 = vmatpush3.bf16.msra.mxu0 %v421_v48  ;;  %999 = vmatprep.mubr.msk.bf16.mxu0 %vm1175_vm0, %v1173_v0 }
 0x11f   :  { %997 = vmatprep.subr.bf16.mxu0 %v1173_v0 }
 0x122   :  { %998 = vmatpush3.bf16.msra.mxu0 %v422_v1 }
 0x123   :  { %1023 = vmatprep.subr.bf16.mxu0 %v1173_v0 }
 0x1f0   :  { %v390_v6 = vpop.f32.mrb[8].mxu0 }
 0x1f1   :  { %v391_v8 = vadd.f32 %v390_v6, %v341_v5  ;;  %v993_v9 = vpop.f32.mrb[9].mxu0  ;;  %v1112_v5 = vld [vmem:[#allocation2 + $0x70] ss:$24 sps:$4 sm:$0xff]   ;;  %v1113_v6 = vld [vmem:[#allocation2 + $0xa0] ss:$24 sps:$4 sm:$0xff]  }
 0x1f2   :  { %v393_v10 = vpop.f32.mrb[10].mxu0  ;;  %v1117_v9 = vld [vmem:[#allocation2 + $0x160] ss:$24 sps:$4 sm:$0xff]  }
 0x1f3   :  { %v394_v11 = vadd.f32 %v393_v10, %v355_v7  ;;  %v994_v12 = vpop.f32.mrb[11].mxu0  ;;  %v398_v13 = vsel %vm397_vm5, %v391_v8, -inf  ;;  %v1115_v7 = vld [vmem:[#allocation2 + $0x100] ss:$24 sps:$4 sm:$0xff]   ;;  %v1118_v10 = vld [vmem:[#allocation2 + $0x14] ss:$24 sps:$4 sm:$0xff]  }
 0x1f4   :  { %399 = vmax.xlane.f32.xlu0 %v398_v13 }
 0x1f5   :  { %v401_v14 = vsel %vm397_vm5, %v394_v11, -inf }
 0x1f8   :  { %402 = vmax.xlane.f32.xlu0 %v401_v14 }
 0x281   :  { %v400_v15 = vpop.xlane.xlu0 %399 }
 0x282   :  { %v404_v16 = vsub.f32 %v391_v8, %v400_v15  ;;  %v1116_v8 = vld [vmem:[#allocation2 + $0x130] ss:$24 sps:$4 sm:$0xff]  }
 0x284   :  { %v406_v17 = vmul.f32 1.442695, %v404_v16 }
 0x285   :  { %v403_v18 = vpop.xlane.xlu0 %402 }
 0x286   :  { %1126 = vpow2.f32 %v406_v17  ;;  %v405_v19 = vsub.f32 %v394_v11, %v403_v18  ;;  %v1119_v11 = vld [vmem:[#allocation2 + $0x44] ss:$24 sps:$4 sm:$0xff]  }
 0x288   :  { %v408_v20 = vmul.f32 1.442695, %v405_v19 }
 0x28a   :  { %1128 = vpow2.f32 %v408_v20 }
 0x290   :  { %v1127_v21 = vpop.eup %1126 }
 0x291   :  { %v410_v22 = vsel %vm397_vm5, %v1127_v21, 0.0 }
 0x292   :  { %411 = vadd.xlane.f32.xlu1 %v410_v22 }
 0x294   :  { %v1129_v23 = vpop.eup %1128 }
 0x295   :  { %v413_v24 = vsel %vm397_vm5, %v1129_v23, 0.0 }
 0x296   :  { %414 = vadd.xlane.f32.xlu1 %v413_v24 }
 0x31f   :  { %v412_v34 = vpop.xlane.xlu1 %411 }
 0x320   :  { %1130 = vrcp.f32 %v412_v34 }
 0x323   :  { %v415_v35 = vpop.xlane.xlu1 %414 }
 0x324   :  { %1132 = vrcp.f32 %v415_v35 }
 0x32a   :  { %v1131_v36 = vpop.eup %1130 }
 0x32b   :  { %v418_v38 = vmul.f32 %v1131_v36, %v1127_v21 }
 0x32e   :  { %v1133_v37 = vpop.eup %1132 }
 0x32f   :  { %v419_v39 = vmul.f32 %v1133_v37, %v1129_v23 }
 0x331   :  { %v420_v40 = vpack.c.bf16 %v419_v39, %v418_v38 }
 0x333   :  { %1000 = vmatmul.mubr.msk.bf16.vlgmr.msra.gmra.mrb[12].mxu0 %vm397_vm5, %v420_v40 }
 0x334   :  { %1039 = vmatprep.mubr.msk.bf16.mxu0 %vm1175_vm0, %v1173_v0  ;;  %1024 = vmatpush3.bf16.msra.mxu0 %v1110_v54 }
 0x335   :  { %1025 = vmatprep.subr.bf16.mxu0 %v1173_v0 }
 0x338   :  { %1026 = vmatpush3.bf16.msra.mxu0 %v1111_v55 }
 0x339   :  { %1027 = vmatprep.subr.bf16.mxu0 %v1173_v0 }
 0x33c   :  { %1028 = vmatpush3.bf16.msra.mxu0 %v1112_v5 }
 0x33d   :  { %1029 = vmatprep.subr.bf16.mxu0 %v1173_v0 }
 0x340   :  { %1030 = vmatpush3.bf16.msra.mxu0 %v1113_v6 }
 0x341   :  { %1031 = vmatprep.subr.bf16.mxu0 %v1173_v0 }
 0x344   :  { %1032 = vmatpush3.bf16.msra.mxu0 %v1114_v3 }
 0x345   :  { %1033 = vmatprep.subr.bf16.mxu0 %v1173_v0 }
 0x348   :  { %1034 = vmatpush3.bf16.msra.mxu0 %v1115_v7 }
 0x349   :  { %1035 = vmatprep.subr.bf16.mxu0 %v1173_v0 }
 0x34c   :  { %1036 = vmatpush3.bf16.msra.mxu0 %v1116_v8 }
 0x34d   :  { %1037 = vmatprep.subr.bf16.mxu0 %v1173_v0 }
 0x350   :  { %1038 = vmatpush3.bf16.msra.mxu0 %v1117_v9 }
 0x406   :  { %v460_v42 = vpop.f32.mrb[12].mxu0 }
 0x407   :  { %v1001_v43 = vpop.f32.mrb[13].mxu0 }
 0x408   :  { %v463_v44 = vpop.f32.mrb[14].mxu0 }
 0x409   :  { %v467_v45 = vpack.c.bf16 %v463_v44, %v460_v42  ;;  %v1002_v46 = vpop.f32.mrb[15].mxu0 }
 0x40b   :  { %1020 = vmatmul.mubr.bf16.vlgmr.msra.gmra.mrb[4].mxu1 %v467_v45 }
 0x40c   :  { %1059 = vmatprep.mubr.msk.bf16.mxu1 %vm1175_vm0, %v1173_v0  ;;  %1044 = vmatpush3.bf16.msra.mxu1 %v1118_v10 }
 0x40d   :  { %1045 = vmatprep.subr.bf16.mxu1 %v1173_v0 }
 0x410   :  { %1046 = vmatpush3.bf16.msra.mxu1 %v1119_v11 }
 0x411   :  { %1047 = vmatprep.subr.bf16.mxu1 %v1173_v0 }
 0x414   :  { %1048 = vmatpush3.bf16.msra.mxu1 %v1120_v25 }
 0x415   :  { %1049 = vmatprep.subr.bf16.mxu1 %v1173_v0 }
 0x418   :  { %1050 = vmatpush3.bf16.msra.mxu1 %v1121_v26 }
 0x419   :  { %1051 = vmatprep.subr.bf16.mxu1 %v1173_v0 }
 0x41c   :  { %1052 = vmatpush3.bf16.msra.mxu1 %v1122_v27 }
 0x41d   :  { %1053 = vmatprep.subr.bf16.mxu1 %v1173_v0 }
 0x420   :  { %1054 = vmatpush3.bf16.msra.mxu1 %v1123_v28 }
 0x421   :  { %1055 = vmatprep.subr.bf16.mxu1 %v1173_v0 }
 0x4de   :  { %v571_v48 = vpop.f32.mrb[4].mxu1 }
 0x4df   :  { %v572_v49 = vadd.f32 %v898_v47, %v571_v48  ;;  %v1021_v50 = vpop.f32.mrb[5].mxu1  ;;  %v916_v48 = vld [vmem:[%s1338_s3 + $0x5] ss:$0 sm:$0xff] }
 0x4e0   :  { %v574_v51 = vpop.f32.mrb[6].mxu1 }
 0x4e1   :  { %v575_v52 = vadd.f32 %v898_v47, %v574_v51  ;;  %578 = vadd.xlane.f32.xlu0 %v572_v49  ;;  %v1022_v53 = vpop.f32.mrb[7].mxu1 }
 0x4e3   :  { %580 = vadd.xlane.f32.xlu1 %v575_v52 }
 0x56e   :  { %v579_v56 = vpop.xlane.xlu0 %578 }
 0x56f   :  { %v582_v57 = vmul.f32 0.03125, %v579_v56 }
 0x570   :  { %v581_v59 = vpop.xlane.xlu1 %580 }
 0x571   :  { %v584_v60 = vsub.f32 %v572_v49, %v582_v57  ;;  %v583_v61 = vmul.f32 0.03125, %v581_v59 }
 0x573   :  { %v585_v62 = vsub.f32 %v575_v52, %v583_v61  ;;  %v586_v63 = vmul.f32 %v1303_v58, %v584_v60 }
 0x575   :  { %v588_v1 = vmul.f32 %v586_v63, %v586_v63  ;;  %v587_v2 = vmul.f32 %v1303_v58, %v585_v62 }
 0x577   :  { %590 = vadd.xlane.f32.xlu0 %v588_v1  ;;  %v589_v4 = vmul.f32 %v587_v2, %v587_v2 }
 0x579   :  { %592 = vadd.xlane.f32.xlu1 %v589_v4 }
 0x604   :  { %v591_v12 = vpop.xlane.xlu0 %590 }
 0x605   :  { %v594_v13 = vmul.f32 0.03125, %v591_v12 }
 0x606   :  { %v593_v14 = vpop.xlane.xlu1 %592 }
 0x607   :  { %v596_v15 = vadd.f32 1e-05, %v594_v13  ;;  %v595_v16 = vmul.f32 0.03125, %v593_v14 }
 0x609   :  { %1134 = vrsqrt.f32 %v596_v15  ;;  %v597_v17 = vadd.f32 1e-05, %v595_v16 }
 0x60b   :  { %1136 = vrsqrt.f32 %v597_v17 }
 0x613   :  { %v1135_v18 = vpop.eup %1134 }
 0x614   :  { %v600_v19 = vmul.f32 %v1135_v18, %v586_v63 }
 0x615   :  { %v1137_v20 = vpop.eup %1136 }
 0x616   :  { %v601_v21 = vmul.f32 %v1137_v20, %v587_v2  ;;  %v602_v22 = vadd.f32 %v600_v19, %v1233_v29  ;;  %v1124_v29 = vld [vmem:[#allocation2 + $0x134] ss:$24 sps:$4 sm:$0xff]  }
 0x617   :  { %1056 = vmatpush3.bf16.msra.mxu1 %v1124_v29 }
 0x618   :  { %v603_v23 = vadd.f32 %v601_v21, %v1238_v30  ;;  %1057 = vmatprep.subr.bf16.mxu1 %v1173_v0  ;;  %v1125_v30 = vld [vmem:[#allocation2 + $0x164] ss:$24 sps:$4 sm:$0xff]  }
 0x61a   :  { %v604_v24 = vpack.c.bf16 %v603_v23, %v602_v22 }
 0x61b   :  { %1058 = vmatpush3.bf16.msra.mxu1 %v1125_v30 }
 0x61c   :  { %1040 = vmatmul.mubr.bf16.vlgmr.msra.gmra.mrb[16].mxu0 %v604_v24 }
 0x6ef   :  { %v708_v32 = vpop.f32.mrb[16].mxu0 }
 0x6f0   :  { %v709_v33 = vadd.f32 %v907_v31, %v708_v32  ;;  %v1041_v34 = vpop.f32.mrb[17].mxu0 }
 0x6f1   :  { %v711_v35 = vpop.f32.mrb[18].mxu0 }
 0x6f2   :  { %v717_v36 = vmul.f32 0.70710677, %v709_v33  ;;  %v712_v37 = vadd.f32 %v907_v31, %v711_v35  ;;  %v1042_v38 = vpop.f32.mrb[19].mxu0  ;;  %v715_v0 = vmul.f32 0.5, %v709_v33 }
 0x6f4   :  { %1138 = verf.f32 %v717_v36  ;;  %v718_v39 = vmul.f32 0.70710677, %v712_v37  ;;  %v716_v43 = vmul.f32 0.5, %v712_v37 }
 0x6f6   :  { %1140 = verf.f32 %v718_v39 }
 0x6fe   :  { %v1139_v40 = vpop.eup %1138 }
 0x6ff   :  { %v721_v41 = vadd.f32 1.0, %v1139_v40 }
 0x700   :  { %v1141_v42 = vpop.eup %1140 }
 0x701   :  { %v722_v44 = vadd.f32 1.0, %v1141_v42  ;;  %v723_v45 = vmul.f32 %v721_v41, %v715_v0 }
 0x703   :  { %v724_v46 = vmul.f32 %v722_v44, %v716_v43 }
 0x705   :  { %v725_v47 = vpack.c.bf16 %v724_v46, %v723_v45 }
 0x707   :  { %1060 = vmatmul.mubr.bf16.vlgmr.msra.gmra.mrb[8].mxu1 %v725_v47 }
 0x7da   :  { %v829_v49 = vpop.f32.mrb[8].mxu1 }
 0x7db   :  { %v830_v50 = vadd.f32 %v916_v48, %v829_v49  ;;  %v1061_v51 = vpop.f32.mrb[9].mxu1 }
 0x7dc   :  { %v832_v52 = vpop.f32.mrb[10].mxu1 }
 0x7dd   :  { %v833_v53 = vadd.f32 %v916_v48, %v832_v52  ;;  %v1062_v54 = vpop.f32.mrb[11].mxu1  ;;  %v836_v55 = vadd.f32 %v830_v50, %v602_v22 }
 0x7df   :  { %838 = vadd.xlane.f32.xlu0 %v836_v55  ;;  %v837_v56 = vadd.f32 %v833_v53, %v603_v23 }
 0x7e1   :  { %840 = vadd.xlane.f32.xlu1 %v837_v56 }
 0x86c   :  { %v839_v57 = vpop.xlane.xlu0 %838 }
 0x86d   :  { %v842_v59 = vmul.f32 0.03125, %v839_v57 }
 0x86e   :  { %v841_v60 = vpop.xlane.xlu1 %840 }
 0x86f   :  { %v844_v61 = vsub.f32 %v836_v55, %v842_v59  ;;  %v843_v62 = vmul.f32 0.03125, %v841_v60 }
 0x871   :  { %v845_v63 = vsub.f32 %v837_v56, %v843_v62  ;;  %v846_v1 = vmul.f32 %v1303_v58, %v844_v61 }
 0x873   :  { %v848_v2 = vmul.f32 %v846_v1, %v846_v1  ;;  %v847_v4 = vmul.f32 %v1303_v58, %v845_v63 }
 0x875   :  { %850 = vadd.xlane.f32.xlu0 %v848_v2  ;;  %v849_v5 = vmul.f32 %v847_v4, %v847_v4 }
 0x877   :  { %852 = vadd.xlane.f32.xlu1 %v849_v5 }
 0x902   :  { %v851_v6 = vpop.xlane.xlu0 %850 }
 0x903   :  { %v854_v3 = vmul.f32 0.03125, %v851_v6 }
 0x904   :  { %v853_v7 = vpop.xlane.xlu1 %852 }
 0x905   :  { %v856_v8 = vadd.f32 1e-05, %v854_v3  ;;  %v855_v9 = vmul.f32 0.03125, %v853_v7 }
 0x907   :  { %1142 = vrsqrt.f32 %v856_v8  ;;  %v857_v10 = vadd.f32 1e-05, %v855_v9 }
 0x909   :  { %1144 = vrsqrt.f32 %v857_v10 }
 0x911   :  { %v1143_v11 = vpop.eup %1142 }
 0x912   :  { %v860_v12 = vmul.f32 %v1143_v11, %v846_v1 }
 0x913   :  { %v1145_v13 = vpop.eup %1144 }
 0x914   :  { %862 = vst [vmem:[%s1339_s4] sm:$0xff] %v860_v12  ;;  %v861_v14 = vmul.f32 %v1145_v13, %v847_v4 }
 0x916   :  { %863 = vst [vmem:[%s1339_s4 + $0x8] sm:$0xff] %v861_v14 }
 0x917   :  { %868 = vsyncpa [#allocation3], 1 }

</bundles_post_ra>
